<compile_context>
chip_gen: v6e
topology: v6e:2x2x1
jax: 0.10.0
libtpu: 0.0.40
codegen_flags: <defaults>
</compile_context>

<pallas_src>
import functools

import jax
import jax.numpy as jnp
from jax import lax
from jax.experimental import pallas as pl
from jax.experimental.pallas import tpu as pltpu

BN_EPS = 1e-5


def _channel_allreduce(v, C, L):
    """Per-channel reduce + broadcast over fused lanes, on the XLU.

    v: (1, L) per-lane partial sums, lane j holds channel j % C, L = Wo * C with
    Wo a power of two.  log2(Wo) roll+add steps leave every lane holding the
    full per-channel total (already broadcast back to all fused positions).
    The result is invariant to the rotate direction, and the adds are exact f32.
    """
    s = v
    shift = C
    while shift < L:
        s = s + pltpu.roll(s, shift=shift, axis=1)
        shift *= 2
    return s


def _fused_block_kernel(xw_ref, wdw_ref, wpw_ref, par_ref, out_ref, *,
                        KH, KW, N, Ho, Wo, C1, C2, inv_cnt):
    """Depthwise conv + BN + ReLU + 1x1 conv + BN + ReLU on lane-fused VMEM data.

    xw_ref : (N, Hp, KW*L1)   per-kw shifted windows, lane = kw*L1 + w*C1 + c
    wdw_ref: (KH*KW, L1)      depthwise tap weights, tiled across Wo
    wpw_ref: (L1, L2)         block-diagonal expansion of the 1x1 weights
    par_ref: (8, max(L1,L2))  rows = [b_dw, g1, be1, b_pw, g2, be2, 0, 0]
    out_ref: (N*Ho, L2)
    """
    L1 = Wo * C1
    L2 = Wo * C2

    xw = xw_ref[...]
    wdw = wdw_ref[...]
    par = par_ref[...]
    bdw, g1, be1 = par[0:1, :L1], par[1:2, :L1], par[2:3, :L1]
    bpw, g2, be2 = par[3:4, :L2], par[4:5, :L2], par[5:6, :L2]

    # ---- depthwise conv: one sublane window per kh (hoisted over kw), then
    #      128-aligned lane slices per kw; pure VPU FMAs ------------------------
    acc = None
    for kh in range(KH):
        xh = lax.slice(xw, (0, kh, 0), (N, kh + Ho, KW * L1))      # (N, Ho, KW*L1)
        for kw in range(KW):
            win = lax.slice(xh, (0, 0, kw * L1), (N, Ho, (kw + 1) * L1))
            t = kh * KW + kw
            term = win * wdw[t:t + 1, :]
            acc = term if acc is None else acc + term
    y1 = acc.reshape(N * Ho, L1) + bdw                              # (R, L1)

    # ---- BN1 (training-mode batch stats, exact f32) + ReLU --------------------
    mean1 = _channel_allreduce(jnp.sum(y1, axis=0, keepdims=True), C1, L1) * inv_cnt
    d1 = y1 - mean1
    var1 = _channel_allreduce(jnp.sum(d1 * d1, axis=0, keepdims=True), C1, L1) * inv_cnt
    z = jnp.maximum(d1 * (g1 * lax.rsqrt(var1 + BN_EPS)) + be1, 0.0)

    # ---- pointwise 1x1 conv: lane-dense block-diagonal MXU matmul -------------
    y2 = jnp.dot(z, wpw_ref[...], preferred_element_type=jnp.float32) + bpw

    # ---- BN2 (exact f32 batch stats) + ReLU -----------------------------------
    mean2 = _channel_allreduce(jnp.sum(y2, axis=0, keepdims=True), C2, L2) * inv_cnt
    d2 = y2 - mean2
    var2 = _channel_allreduce(jnp.sum(d2 * d2, axis=0, keepdims=True), C2, L2) * inv_cnt
    out_ref[...] = jnp.maximum(d2 * (g2 * lax.rsqrt(var2 + BN_EPS)) + be2, 0.0)


def _full_spec(shape):
    nd = len(shape)
    return pl.BlockSpec(shape, lambda i, _nd=nd: (0,) * _nd)


@functools.partial(
    jax.jit,
    static_argnames=("depth_multiplier", "kernel_size", "stride", "padding"))
def depthwise_conv_block(x_nchw, params, *, depth_multiplier, kernel_size,
                         stride, padding):
    w_dw = params["w_dw"]        # (C1, 1, KH, KW)   torch layout
    b_dw = params["b_dw"]        # (C1,)
    g1, be1 = params["gamma1"], params["beta1"]
    w_pw = params["w_pw"]        # (C2, C1, 1, 1)    torch layout
    b_pw = params["b_pw"]        # (C2,)
    g2, be2 = params["gamma2"], params["beta2"]

    N, Cin, H, W = x_nchw.shape
    KH = KW = kernel_size
    S, P = stride, padding
    if S != 1:
        # TODO(synk): stride > 1 needs a strided-lane gather in the fused layout.
        raise NotImplementedError("fused-lane Pallas path implemented for stride == 1")
    C1 = Cin * depth_multiplier
    C2 = w_pw.shape[0]
    Ho = (H + 2 * P - KH) // S + 1
    Wo = (W + 2 * P - KW) // S + 1
    if Wo & (Wo - 1):
        # TODO(synk): non-power-of-two Wo needs a different channel-reduce tree.
        raise NotImplementedError("lane roll-tree reduction needs power-of-two Wo")
    Hp = H + 2 * P
    L1, L2 = Wo * C1, Wo * C2
    Lp = max(L1, L2)
    R = N * Ho

    # ---- layout glue: one fused XLA producer under jit ------------------------
    x_nhwc = jnp.transpose(x_nchw, (0, 2, 3, 1))
    x_rep = jnp.repeat(x_nhwc, depth_multiplier, axis=-1)           # (N, H, W, C1)
    x_pad = jnp.pad(x_rep, ((0, 0), (P, P), (P, P), (0, 0)))        # (N, Hp, Wp, C1)
    # per-kw shifted windows placed contiguously on the lane axis so every
    # in-kernel lane slice is 128-aligned (no cross-lane relayouts in-kernel)
    xw = jnp.concatenate(
        [x_pad[:, :, kw:kw + Wo, :].reshape(N, Hp, L1) for kw in range(KW)],
        axis=-1)                                                    # (N, Hp, KW*L1)

    # depthwise taps tiled across Wo: wdw_f[t, wo*C1 + c] = w_dw[c, 0, kh, kw]
    w_taps = jnp.transpose(w_dw[:, 0, :, :], (1, 2, 0)).reshape(KH * KW, C1)
    wdw_f = jnp.tile(w_taps, (1, Wo))                               # (KH*KW, L1)

    # one stacked (8, Lp) per-lane parameter array (single DMA instead of 7)
    def lane_tile(v, L):
        return jnp.pad(jnp.tile(v, Wo), (0, Lp - L))
    par = jnp.stack([lane_tile(b_dw, L1), lane_tile(g1, L1), lane_tile(be1, L1),
                     lane_tile(b_pw, L2), lane_tile(g2, L2), lane_tile(be2, L2),
                     jnp.zeros((Lp,), jnp.float32), jnp.zeros((Lp,), jnp.float32)])

    # block-diagonal expansion of the 1x1 conv weights (fused-lane -> fused-lane)
    w_pw_mat = jnp.transpose(w_pw[:, :, 0, 0], (1, 0))              # (C1, C2)
    wpw_big = jnp.kron(jnp.eye(Wo, dtype=w_pw_mat.dtype), w_pw_mat)  # (L1, L2)

    kernel = functools.partial(
        _fused_block_kernel,
        KH=KH, KW=KW, N=N, Ho=Ho, Wo=Wo, C1=C1, C2=C2,
        inv_cnt=1.0 / float(N * Ho * Wo))

    flops = 2 * KH * KW * R * L1 + 2 * R * L1 * L2 + 12 * R * (L1 + L2)
    bytes_accessed = 4 * (xw.size + wdw_f.size + wpw_big.size + par.size + R * L2)

    out2d = pl.pallas_call(
        kernel,
        grid=(1,),
        in_specs=[_full_spec(xw.shape), _full_spec(wdw_f.shape),
                  _full_spec(wpw_big.shape), _full_spec(par.shape)],
        out_specs=_full_spec((R, L2)),
        out_shape=jax.ShapeDtypeStruct((R, L2), jnp.float32),
        compiler_params=pltpu.CompilerParams(dimension_semantics=("arbitrary",)),
        cost_estimate=pl.CostEstimate(flops=flops,
                                      transcendentals=2 * (L1 + L2),
                                      bytes_accessed=bytes_accessed),
    )(xw, wdw_f, wpw_big, par)

    out_nhwc = out2d.reshape(N, Ho, Wo, C2)
    return jnp.transpose(out_nhwc, (0, 3, 1, 2))                    # back to NCHW


def ref_forward(x, params, *, kernel_size, stride, padding):
    """Pure-JAX reference mirroring the PyTorch module (training-mode BN)."""
    Cin = x.shape[1]
    dn = ("NCHW", "OIHW", "NCHW")
    pad = ((padding, padding), (padding, padding))
    y1 = lax.conv_general_dilated(x, params["w_dw"], (stride, stride), pad,
                                  feature_group_count=Cin, dimension_numbers=dn)
    y1 = y1 + params["b_dw"][None, :, None, None]
    m1 = y1.mean(axis=(0, 2, 3))
    v1 = y1.var(axis=(0, 2, 3))
    y1 = (y1 - m1[None, :, None, None]) / jnp.sqrt(v1 + BN_EPS)[None, :, None, None]
    y1 = y1 * params["gamma1"][None, :, None, None] + params["beta1"][None, :, None, None]
    y1 = jnp.maximum(y1, 0.0)
    y2 = lax.conv_general_dilated(y1, params["w_pw"], (1, 1), ((0, 0), (0, 0)),
                                  dimension_numbers=dn)
    y2 = y2 + params["b_pw"][None, :, None, None]
    m2 = y2.mean(axis=(0, 2, 3))
    v2 = y2.var(axis=(0, 2, 3))
    y2 = (y2 - m2[None, :, None, None]) / jnp.sqrt(v2 + BN_EPS)[None, :, None, None]
    y2 = y2 * params["gamma2"][None, :, None, None] + params["beta2"][None, :, None, None]
    return jnp.maximum(y2, 0.0)


if __name__ == "__main__":
    key = jax.random.PRNGKey(0)
    ks = jax.random.split(key, 9)

    # Module config: Depthwise_conv_block(4, 8, depth_multiplier=2, kernel_size=3,
    #                                     stride=1, padding=1)
    N, Cin, H, W = 2, 4, 16, 16
    depth_multiplier, pointwise_filters = 2, 8
    kernel_size, stride, padding = 3, 1, 1
    C1 = Cin * depth_multiplier
    C2 = pointwise_filters

    x = jax.random.normal(ks[0], (N, Cin, H, W), jnp.float32)
    params = {
        "w_dw": 0.2 * jax.random.normal(ks[1], (C1, 1, kernel_size, kernel_size), jnp.float32),
        "b_dw": 0.1 * jax.random.normal(ks[2], (C1,), jnp.float32),
        "gamma1": 1.0 + 0.1 * jax.random.normal(ks[3], (C1,), jnp.float32),
        "beta1": 0.1 * jax.random.normal(ks[4], (C1,), jnp.float32),
        "w_pw": 0.2 * jax.random.normal(ks[5], (C2, C1, 1, 1), jnp.float32),
        "b_pw": 0.1 * jax.random.normal(ks[6], (C2,), jnp.float32),
        "gamma2": 1.0 + 0.1 * jax.random.normal(ks[7], (C2,), jnp.float32),
        "beta2": 0.1 * jax.random.normal(ks[8], (C2,), jnp.float32),
    }

    out = depthwise_conv_block(
        x, params, depth_multiplier=depth_multiplier,
        kernel_size=kernel_size, stride=stride, padding=padding)
    out = jax.block_until_ready(out)

    ref = ref_forward(x, params, kernel_size=kernel_size, stride=stride, padding=padding)
    assert out.shape == (N, C2, H, W), out.shape
    err = float(jnp.max(jnp.abs(out - ref)))
    assert jnp.allclose(out, ref, atol=1e-3, rtol=1e-3), f"max abs err = {err}"
    print("KERNEL_OK")
</pallas_src>

<mosaic_0001>
module attributes {stable_mosaic.version = 11 : i64} {
  func.func @_fused_block_kernel(%arg0: i32, %arg1: memref<2x18x384xf32, #tpu.memory_space<vmem>>, %arg2: memref<9x128xf32, #tpu.memory_space<vmem>>, %arg3: memref<128x128xf32, #tpu.memory_space<vmem>>, %arg4: memref<8x128xf32, #tpu.memory_space<vmem>>, %arg5: memref<32x128xf32, #tpu.memory_space<vmem>>) attributes {dimension_semantics = [#tpu.dimension_semantics<arbitrary>], iteration_bounds = array<i64: 1>, scalar_prefetch = 0 : i64, scratch_operands = 0 : i64, tpu.core_type = #tpu.core_type<tc>, window_params = [{pipeline_mode = #tpu.pipeline_mode<synchronous>, transform_indices = @transform_0, window_bounds = array<i64: 2, 18, 384>}, {pipeline_mode = #tpu.pipeline_mode<synchronous>, transform_indices = @transform_1, window_bounds = array<i64: 9, 128>}, {pipeline_mode = #tpu.pipeline_mode<synchronous>, transform_indices = @transform_2, window_bounds = array<i64: 128, 128>}, {pipeline_mode = #tpu.pipeline_mode<synchronous>, transform_indices = @transform_3, window_bounds = array<i64: 8, 128>}, {pipeline_mode = #tpu.pipeline_mode<synchronous>, transform_indices = @transform_4, window_bounds = array<i64: 32, 128>}]} {
    %c0 = arith.constant 0 : index
    %c0_0 = arith.constant 0 : index
    %c0_1 = arith.constant 0 : index
    %0 = vector.load %arg1[%c0, %c0_0, %c0_1] : memref<2x18x384xf32, #tpu.memory_space<vmem>>, vector<2x18x384xf32>
    %c0_2 = arith.constant 0 : index
    %c0_3 = arith.constant 0 : index
    %1 = vector.load %arg2[%c0_2, %c0_3] : memref<9x128xf32, #tpu.memory_space<vmem>>, vector<9x128xf32>
    %c0_4 = arith.constant 0 : index
    %c0_5 = arith.constant 0 : index
    %2 = vector.load %arg4[%c0_4, %c0_5] : memref<8x128xf32, #tpu.memory_space<vmem>>, vector<8x128xf32>
    %3 = vector.extract_strided_slice %2 {offsets = [0, 0], sizes = [1, 128], strides = [1, 1]} : vector<8x128xf32> to vector<1x128xf32>
    %4 = vector.extract_strided_slice %2 {offsets = [1, 0], sizes = [1, 128], strides = [1, 1]} : vector<8x128xf32> to vector<1x128xf32>
    %5 = vector.extract_strided_slice %2 {offsets = [2, 0], sizes = [1, 128], strides = [1, 1]} : vector<8x128xf32> to vector<1x128xf32>
    %6 = vector.extract_strided_slice %2 {offsets = [3, 0], sizes = [1, 128], strides = [1, 1]} : vector<8x128xf32> to vector<1x128xf32>
    %7 = vector.extract_strided_slice %2 {offsets = [4, 0], sizes = [1, 128], strides = [1, 1]} : vector<8x128xf32> to vector<1x128xf32>
    %8 = vector.extract_strided_slice %2 {offsets = [5, 0], sizes = [1, 128], strides = [1, 1]} : vector<8x128xf32> to vector<1x128xf32>
    %9 = vector.extract_strided_slice %0 {offsets = [0, 0, 0], sizes = [2, 16, 384], strides = [1, 1, 1]} : vector<2x18x384xf32> to vector<2x16x384xf32>
    %10 = vector.extract_strided_slice %9 {offsets = [0, 0, 0], sizes = [2, 16, 128], strides = [1, 1, 1]} : vector<2x16x384xf32> to vector<2x16x128xf32>
    %11 = vector.extract_strided_slice %1 {offsets = [0, 0], sizes = [1, 128], strides = [1, 1]} : vector<9x128xf32> to vector<1x128xf32>
    %12 = vector.shape_cast %11 : vector<1x128xf32> to vector<1x1x128xf32>
    %13 = vector.broadcast %12 : vector<1x1x128xf32> to vector<2x16x128xf32>
    %14 = arith.mulf %10, %13 : vector<2x16x128xf32>
    %15 = vector.extract_strided_slice %9 {offsets = [0, 0, 128], sizes = [2, 16, 128], strides = [1, 1, 1]} : vector<2x16x384xf32> to vector<2x16x128xf32>
    %16 = vector.extract_strided_slice %1 {offsets = [1, 0], sizes = [1, 128], strides = [1, 1]} : vector<9x128xf32> to vector<1x128xf32>
    %17 = vector.shape_cast %16 : vector<1x128xf32> to vector<1x1x128xf32>
    %18 = vector.broadcast %17 : vector<1x1x128xf32> to vector<2x16x128xf32>
    %19 = arith.mulf %15, %18 : vector<2x16x128xf32>
    %20 = arith.addf %14, %19 : vector<2x16x128xf32>
    %21 = vector.extract_strided_slice %9 {offsets = [0, 0, 256], sizes = [2, 16, 128], strides = [1, 1, 1]} : vector<2x16x384xf32> to vector<2x16x128xf32>
    %22 = vector.extract_strided_slice %1 {offsets = [2, 0], sizes = [1, 128], strides = [1, 1]} : vector<9x128xf32> to vector<1x128xf32>
    %23 = vector.shape_cast %22 : vector<1x128xf32> to vector<1x1x128xf32>
    %24 = vector.broadcast %23 : vector<1x1x128xf32> to vector<2x16x128xf32>
    %25 = arith.mulf %21, %24 : vector<2x16x128xf32>
    %26 = arith.addf %20, %25 : vector<2x16x128xf32>
    %27 = vector.extract_strided_slice %0 {offsets = [0, 1, 0], sizes = [2, 16, 384], strides = [1, 1, 1]} : vector<2x18x384xf32> to vector<2x16x384xf32>
    %28 = vector.extract_strided_slice %27 {offsets = [0, 0, 0], sizes = [2, 16, 128], strides = [1, 1, 1]} : vector<2x16x384xf32> to vector<2x16x128xf32>
    %29 = vector.extract_strided_slice %1 {offsets = [3, 0], sizes = [1, 128], strides = [1, 1]} : vector<9x128xf32> to vector<1x128xf32>
    %30 = vector.shape_cast %29 : vector<1x128xf32> to vector<1x1x128xf32>
    %31 = vector.broadcast %30 : vector<1x1x128xf32> to vector<2x16x128xf32>
    %32 = arith.mulf %28, %31 : vector<2x16x128xf32>
    %33 = arith.addf %26, %32 : vector<2x16x128xf32>
    %34 = vector.extract_strided_slice %27 {offsets = [0, 0, 128], sizes = [2, 16, 128], strides = [1, 1, 1]} : vector<2x16x384xf32> to vector<2x16x128xf32>
    %35 = vector.extract_strided_slice %1 {offsets = [4, 0], sizes = [1, 128], strides = [1, 1]} : vector<9x128xf32> to vector<1x128xf32>
    %36 = vector.shape_cast %35 : vector<1x128xf32> to vector<1x1x128xf32>
    %37 = vector.broadcast %36 : vector<1x1x128xf32> to vector<2x16x128xf32>
    %38 = arith.mulf %34, %37 : vector<2x16x128xf32>
    %39 = arith.addf %33, %38 : vector<2x16x128xf32>
    %40 = vector.extract_strided_slice %27 {offsets = [0, 0, 256], sizes = [2, 16, 128], strides = [1, 1, 1]} : vector<2x16x384xf32> to vector<2x16x128xf32>
    %41 = vector.extract_strided_slice %1 {offsets = [5, 0], sizes = [1, 128], strides = [1, 1]} : vector<9x128xf32> to vector<1x128xf32>
    %42 = vector.shape_cast %41 : vector<1x128xf32> to vector<1x1x128xf32>
    %43 = vector.broadcast %42 : vector<1x1x128xf32> to vector<2x16x128xf32>
    %44 = arith.mulf %40, %43 : vector<2x16x128xf32>
    %45 = arith.addf %39, %44 : vector<2x16x128xf32>
    %46 = vector.extract_strided_slice %0 {offsets = [0, 2, 0], sizes = [2, 16, 384], strides = [1, 1, 1]} : vector<2x18x384xf32> to vector<2x16x384xf32>
    %47 = vector.extract_strided_slice %46 {offsets = [0, 0, 0], sizes = [2, 16, 128], strides = [1, 1, 1]} : vector<2x16x384xf32> to vector<2x16x128xf32>
    %48 = vector.extract_strided_slice %1 {offsets = [6, 0], sizes = [1, 128], strides = [1, 1]} : vector<9x128xf32> to vector<1x128xf32>
    %49 = vector.shape_cast %48 : vector<1x128xf32> to vector<1x1x128xf32>
    %50 = vector.broadcast %49 : vector<1x1x128xf32> to vector<2x16x128xf32>
    %51 = arith.mulf %47, %50 : vector<2x16x128xf32>
    %52 = arith.addf %45, %51 : vector<2x16x128xf32>
    %53 = vector.extract_strided_slice %46 {offsets = [0, 0, 128], sizes = [2, 16, 128], strides = [1, 1, 1]} : vector<2x16x384xf32> to vector<2x16x128xf32>
    %54 = vector.extract_strided_slice %1 {offsets = [7, 0], sizes = [1, 128], strides = [1, 1]} : vector<9x128xf32> to vector<1x128xf32>
    %55 = vector.shape_cast %54 : vector<1x128xf32> to vector<1x1x128xf32>
    %56 = vector.broadcast %55 : vector<1x1x128xf32> to vector<2x16x128xf32>
    %57 = arith.mulf %53, %56 : vector<2x16x128xf32>
    %58 = arith.addf %52, %57 : vector<2x16x128xf32>
    %59 = vector.extract_strided_slice %46 {offsets = [0, 0, 256], sizes = [2, 16, 128], strides = [1, 1, 1]} : vector<2x16x384xf32> to vector<2x16x128xf32>
    %60 = vector.extract_strided_slice %1 {offsets = [8, 0], sizes = [1, 128], strides = [1, 1]} : vector<9x128xf32> to vector<1x128xf32>
    %61 = vector.shape_cast %60 : vector<1x128xf32> to vector<1x1x128xf32>
    %62 = vector.broadcast %61 : vector<1x1x128xf32> to vector<2x16x128xf32>
    %63 = arith.mulf %59, %62 : vector<2x16x128xf32>
    %64 = arith.addf %58, %63 : vector<2x16x128xf32>
    %65 = vector.shape_cast %64 : vector<2x16x128xf32> to vector<32x128xf32>
    %66 = vector.broadcast %3 : vector<1x128xf32> to vector<32x128xf32>
    %67 = arith.addf %65, %66 : vector<32x128xf32>
    %cst = arith.constant dense<0.000000e+00> : vector<128xf32>
    %68 = vector.multi_reduction <add>, %67, %cst [0] : vector<32x128xf32> to vector<128xf32>
    %69 = vector.shape_cast %68 : vector<128xf32> to vector<1x128xf32>
    %c8_i32 = arith.constant 8 : i32
    %70 = tpu.dynamic_rotate %69 by %c8_i32 dim 1 : vector<1x128xf32>, i32 -> vector<1x128xf32>
    %71 = arith.addf %69, %70 : vector<1x128xf32>
    %c16_i32 = arith.constant 16 : i32
    %72 = tpu.dynamic_rotate %71 by %c16_i32 dim 1 : vector<1x128xf32>, i32 -> vector<1x128xf32>
    %73 = arith.addf %71, %72 : vector<1x128xf32>
    %c32_i32 = arith.constant 32 : i32
    %74 = tpu.dynamic_rotate %73 by %c32_i32 dim 1 : vector<1x128xf32>, i32 -> vector<1x128xf32>
    %75 = arith.addf %73, %74 : vector<1x128xf32>
    %c64_i32 = arith.constant 64 : i32
    %76 = tpu.dynamic_rotate %75 by %c64_i32 dim 1 : vector<1x128xf32>, i32 -> vector<1x128xf32>
    %77 = arith.addf %75, %76 : vector<1x128xf32>
    %cst_6 = arith.constant 0.001953125 : f32
    %78 = vector.broadcast %cst_6 : f32 to vector<1x128xf32>
    %79 = arith.mulf %77, %78 : vector<1x128xf32>
    %80 = vector.broadcast %79 : vector<1x128xf32> to vector<32x128xf32>
    %81 = arith.subf %67, %80 : vector<32x128xf32>
    %82 = arith.mulf %81, %81 : vector<32x128xf32>
    %cst_7 = arith.constant dense<0.000000e+00> : vector<128xf32>
    %83 = vector.multi_reduction <add>, %82, %cst_7 [0] : vector<32x128xf32> to vector<128xf32>
    %84 = vector.shape_cast %83 : vector<128xf32> to vector<1x128xf32>
    %c8_i32_8 = arith.constant 8 : i32
    %85 = tpu.dynamic_rotate %84 by %c8_i32_8 dim 1 : vector<1x128xf32>, i32 -> vector<1x128xf32>
    %86 = arith.addf %84, %85 : vector<1x128xf32>
    %c16_i32_9 = arith.constant 16 : i32
    %87 = tpu.dynamic_rotate %86 by %c16_i32_9 dim 1 : vector<1x128xf32>, i32 -> vector<1x128xf32>
    %88 = arith.addf %86, %87 : vector<1x128xf32>
    %c32_i32_10 = arith.constant 32 : i32
    %89 = tpu.dynamic_rotate %88 by %c32_i32_10 dim 1 : vector<1x128xf32>, i32 -> vector<1x128xf32>
    %90 = arith.addf %88, %89 : vector<1x128xf32>
    %c64_i32_11 = arith.constant 64 : i32
    %91 = tpu.dynamic_rotate %90 by %c64_i32_11 dim 1 : vector<1x128xf32>, i32 -> vector<1x128xf32>
    %92 = arith.addf %90, %91 : vector<1x128xf32>
    %cst_12 = arith.constant 0.001953125 : f32
    %93 = vector.broadcast %cst_12 : f32 to vector<1x128xf32>
    %94 = arith.mulf %92, %93 : vector<1x128xf32>
    %cst_13 = arith.constant 9.99999974E-6 : f32
    %95 = vector.broadcast %cst_13 : f32 to vector<1x128xf32>
    %96 = arith.addf %94, %95 : vector<1x128xf32>
    %97 = math.rsqrt %96 : vector<1x128xf32>
    %98 = arith.mulf %4, %97 : vector<1x128xf32>
    %99 = vector.broadcast %98 : vector<1x128xf32> to vector<32x128xf32>
    %100 = arith.mulf %81, %99 : vector<32x128xf32>
    %101 = vector.broadcast %5 : vector<1x128xf32> to vector<32x128xf32>
    %102 = arith.addf %100, %101 : vector<32x128xf32>
    %cst_14 = arith.constant 0.000000e+00 : f32
    %103 = vector.broadcast %cst_14 : f32 to vector<32x128xf32>
    %104 = arith.maximumf %102, %103 : vector<32x128xf32>
    %c0_15 = arith.constant 0 : index
    %c0_16 = arith.constant 0 : index
    %105 = vector.load %arg3[%c0_15, %c0_16] : memref<128x128xf32, #tpu.memory_space<vmem>>, vector<128x128xf32>
    %cst_17 = arith.constant dense<0.000000e+00> : vector<32x128xf32>
    %106 = tpu.matmul %104, %105, %cst_17 {dimension_numbers = #tpu.dot_dimension_numbers<[1], [0], [0], [1], [0, 0, 1, 1], [], []>} : vector<32x128xf32>, vector<128x128xf32>, vector<32x128xf32> -> vector<32x128xf32>
    %107 = vector.broadcast %6 : vector<1x128xf32> to vector<32x128xf32>
    %108 = arith.addf %106, %107 : vector<32x128xf32>
    %cst_18 = arith.constant dense<0.000000e+00> : vector<128xf32>
    %109 = vector.multi_reduction <add>, %108, %cst_18 [0] : vector<32x128xf32> to vector<128xf32>
    %110 = vector.shape_cast %109 : vector<128xf32> to vector<1x128xf32>
    %c8_i32_19 = arith.constant 8 : i32
    %111 = tpu.dynamic_rotate %110 by %c8_i32_19 dim 1 : vector<1x128xf32>, i32 -> vector<1x128xf32>
    %112 = arith.addf %110, %111 : vector<1x128xf32>
    %c16_i32_20 = arith.constant 16 : i32
    %113 = tpu.dynamic_rotate %112 by %c16_i32_20 dim 1 : vector<1x128xf32>, i32 -> vector<1x128xf32>
    %114 = arith.addf %112, %113 : vector<1x128xf32>
    %c32_i32_21 = arith.constant 32 : i32
    %115 = tpu.dynamic_rotate %114 by %c32_i32_21 dim 1 : vector<1x128xf32>, i32 -> vector<1x128xf32>
    %116 = arith.addf %114, %115 : vector<1x128xf32>
    %c64_i32_22 = arith.constant 64 : i32
    %117 = tpu.dynamic_rotate %116 by %c64_i32_22 dim 1 : vector<1x128xf32>, i32 -> vector<1x128xf32>
    %118 = arith.addf %116, %117 : vector<1x128xf32>
    %cst_23 = arith.constant 0.001953125 : f32
    %119 = vector.broadcast %cst_23 : f32 to vector<1x128xf32>
    %120 = arith.mulf %118, %119 : vector<1x128xf32>
    %121 = vector.broadcast %120 : vector<1x128xf32> to vector<32x128xf32>
    %122 = arith.subf %108, %121 : vector<32x128xf32>
    %123 = arith.mulf %122, %122 : vector<32x128xf32>
    %cst_24 = arith.constant dense<0.000000e+00> : vector<128xf32>
    %124 = vector.multi_reduction <add>, %123, %cst_24 [0] : vector<32x128xf32> to vector<128xf32>
    %125 = vector.shape_cast %124 : vector<128xf32> to vector<1x128xf32>
    %c8_i32_25 = arith.constant 8 : i32
    %126 = tpu.dynamic_rotate %125 by %c8_i32_25 dim 1 : vector<1x128xf32>, i32 -> vector<1x128xf32>
    %127 = arith.addf %125, %126 : vector<1x128xf32>
    %c16_i32_26 = arith.constant 16 : i32
    %128 = tpu.dynamic_rotate %127 by %c16_i32_26 dim 1 : vector<1x128xf32>, i32 -> vector<1x128xf32>
    %129 = arith.addf %127, %128 : vector<1x128xf32>
    %c32_i32_27 = arith.constant 32 : i32
    %130 = tpu.dynamic_rotate %129 by %c32_i32_27 dim 1 : vector<1x128xf32>, i32 -> vector<1x128xf32>
    %131 = arith.addf %129, %130 : vector<1x128xf32>
    %c64_i32_28 = arith.constant 64 : i32
    %132 = tpu.dynamic_rotate %131 by %c64_i32_28 dim 1 : vector<1x128xf32>, i32 -> vector<1x128xf32>
    %133 = arith.addf %131, %132 : vector<1x128xf32>
    %cst_29 = arith.constant 0.001953125 : f32
    %134 = vector.broadcast %cst_29 : f32 to vector<1x128xf32>
    %135 = arith.mulf %133, %134 : vector<1x128xf32>
    %cst_30 = arith.constant 9.99999974E-6 : f32
    %136 = vector.broadcast %cst_30 : f32 to vector<1x128xf32>
    %137 = arith.addf %135, %136 : vector<1x128xf32>
    %138 = math.rsqrt %137 : vector<1x128xf32>
    %139 = arith.mulf %7, %138 : vector<1x128xf32>
    %140 = vector.broadcast %139 : vector<1x128xf32> to vector<32x128xf32>
    %141 = arith.mulf %122, %140 : vector<32x128xf32>
    %142 = vector.broadcast %8 : vector<1x128xf32> to vector<32x128xf32>
    %143 = arith.addf %141, %142 : vector<32x128xf32>
    %cst_31 = arith.constant 0.000000e+00 : f32
    %144 = vector.broadcast %cst_31 : f32 to vector<32x128xf32>
    %145 = arith.maximumf %143, %144 : vector<32x128xf32>
    %c0_32 = arith.constant 0 : index
    %c0_33 = arith.constant 0 : index
    %146 = vector.load %arg5[%c0_32, %c0_33] : memref<32x128xf32, #tpu.memory_space<vmem>>, vector<32x128xf32>
    tpu.vector_store %arg5[%c0_32, %c0_33], %145 {strides = array<i32>} : memref<32x128xf32, #tpu.memory_space<vmem>>, vector<32x128xf32>,
    return
  }
  func.func @transform_0(%arg0: i32) -> (i32, i32, i32) {
    %c0_i32 = arith.constant 0 : i32
    %c0_i32_0 = arith.constant 0 : i32
    %c0_i32_1 = arith.constant 0 : i32
    %c0_i32_2 = arith.constant 0 : i32
    return %c0_i32, %c0_i32_0, %c0_i32_1 : i32, i32, i32
  }
  func.func @transform_1(%arg0: i32) -> (i32, i32) {
    %c0_i32 = arith.constant 0 : i32
    %c0_i32_0 = arith.constant 0 : i32
    %c0_i32_1 = arith.constant 0 : i32
    return %c0_i32, %c0_i32_0 : i32, i32
  }
  func.func @transform_2(%arg0: i32) -> (i32, i32) {
    %c0_i32 = arith.constant 0 : i32
    %c0_i32_0 = arith.constant 0 : i32
    %c0_i32_1 = arith.constant 0 : i32
    return %c0_i32, %c0_i32_0 : i32, i32
  }
  func.func @transform_3(%arg0: i32) -> (i32, i32) {
    %c0_i32 = arith.constant 0 : i32
    %c0_i32_0 = arith.constant 0 : i32
    %c0_i32_1 = arith.constant 0 : i32
    return %c0_i32, %c0_i32_0 : i32, i32
  }
  func.func @transform_4(%arg0: i32) -> (i32, i32) {
    %c0_i32 = arith.constant 0 : i32
    %c0_i32_0 = arith.constant 0 : i32
    %c0_i32_1 = arith.constant 0 : i32
    return %c0_i32, %c0_i32_0 : i32, i32
  }
}

</mosaic_0001>

<bundles_post_ra>
// kernel: tile.37
= control target key start
LH: loop header
LB: loop body
LE: loop exit
PB: predicated region body
PF: predicated region fallthrough
CT: control target
= control target key end

     0   :  { %vm6_vm0 = vcmask 1043458   ;;  %s53_s10 = smov 3  ;;  %s56_s11 = smov 12  ;;  %vm10_vm1 = vcmask 1045508   ;;  %vm14_vm2 = vcmask 1047558   ;;  %vm16_vm3 = vcmask 64512   ;;  %s978_s0 = inlined_call_operand.vmem [shape: f32[9,16,8], index: 0, kind: input, shape index: {}]   ;;  %s979_s1 = inlined_call_operand.vmem [shape: f32[9,128], index: 1, kind: output, shape index: {}]  }
   0x1   :  { %v470_v0 = vld [vmem:[%s978_s0 + $0x8e] sm:$0x1]   ;;  %v464_v1 = vld [vmem:[%s978_s0 + $0x8f] sm:$0x1]   ;;  %s565_s12 = smov 112   ;;  %s566_s13 = smov 120  }
   0x2   :  { %76 = vrot.lane.b32.xlu1 %v470_v0, %s565_s12  ;;  %47 = vrot.lane.b32.xlu0 %v464_v1, %s566_s13  ;;  %v466_v2 = vld [vmem:[%s978_s0 + $0xe] ss:$16 sm:%s53_s10]   ;;  %s61_s16 = smov 48  ;;  %s66_s17 = smov 192  ;;  %vm43_vm4 = vcmask 1048512   ;;  %vm72_vm5 = vcmask 982912  }
   0x3   :  { %v467_v3 = vld [vmem:[%s978_s0 + $0xe] ss:$16 sm:%s56_s11]   ;;  %s24_s22 = smov 3  ;;  %s27_s23 = smov 12  ;;  %v476_v15 = vld [vmem:[%s978_s0 + $0x8d] sm:$0x1]  }
   0x4   :  { %v468_v4 = vld [vmem:[%s978_s0 + $0xe] ss:$16 sm:%s61_s16]   ;;  %v59_v5 = vsel %vm6_vm0, %v467_v3, %v466_v2  ;;  %v460_v7 = vld [vmem:[%s978_s0 + $0xf] ss:$16 sm:%s24_s22]   ;;  %s32_s28 = smov 48  ;;  %s37_s29 = smov 192 }
   0x5   :  { %v469_v6 = vld [vmem:[%s978_s0 + $0xe] ss:$16 sm:%s66_s17]   ;;  %v64_v8 = vsel %vm10_vm1, %v468_v4, %v59_v5  ;;  %v461_v9 = vld [vmem:[%s978_s0 + $0xf] ss:$16 sm:%s27_s23]   ;;  %s82_s5 = smov 3  ;;  %s85_s8 = smov 12 }
   0x6   :  { %v462_v10 = vld [vmem:[%s978_s0 + $0xf] ss:$16 sm:%s32_s28]   ;;  %v69_v11 = vsel %vm14_vm2, %v469_v6, %v64_v8  ;;  %v30_v12 = vsel %vm6_vm0, %v461_v9, %v460_v7  ;;  %s90_s9 = smov 48  ;;  %v472_v16 = vld [vmem:[%s978_s0 + $0xd] ss:$16 sm:%s82_s5]   ;;  %s95_s15 = smov 192 }
   0x7   :  { %v463_v13 = vld [vmem:[%s978_s0 + $0xf] ss:$16 sm:%s37_s29]   ;;  %70 = vrot.lane.b32.xlu1 %v69_v11, %s565_s12  ;;  %v35_v14 = vsel %vm10_vm1, %v462_v10, %v30_v12  ;;  %s111_s20 = smov 3  ;;  %s114_s21 = smov 12  ;;  %v482_v26 = vld [vmem:[%s978_s0 + $0x8c] sm:$0x1]  }
   0x8   :  { %v40_v17 = vsel %vm14_vm2, %v463_v13, %v35_v14  ;;  %v473_v18 = vld [vmem:[%s978_s0 + $0xd] ss:$16 sm:%s85_s8]   ;;  %s119_s23 = smov 48  ;;  %s124_s24 = smov 192  ;;  %v478_v23 = vld [vmem:[%s978_s0 + $0xc] ss:$16 sm:%s111_s20]  }
   0x9   :  { %v474_v19 = vld [vmem:[%s978_s0 + $0xd] ss:$16 sm:%s90_s9]   ;;  %41 = vrot.lane.b32.xlu0 %v40_v17, %s566_s13  ;;  %v88_v20 = vsel %vm6_vm0, %v473_v18, %v472_v16  ;;  %s140_s29 = smov 3  ;;  %s567_s30 = smov 104   ;;  %v488_v37 = vld [vmem:[%s978_s0 + $0x8b] sm:$0x1]  }
   0xa   :  { %v475_v21 = vld [vmem:[%s978_s0 + $0xd] ss:$16 sm:%s95_s15]   ;;  %v93_v22 = vsel %vm10_vm1, %v474_v19, %v88_v20  ;;  %v479_v24 = vld [vmem:[%s978_s0 + $0xc] ss:$16 sm:%s114_s21]   ;;  %s143_s6 = smov 12  ;;  %s148_s7 = smov 48 }
   0xb   :  { %105 = vrot.lane.b32.xlu1 %v476_v15, %s567_s30  ;;  %v98_v25 = vsel %vm14_vm2, %v475_v21, %v93_v22  ;;  %v117_v27 = vsel %vm6_vm0, %v479_v24, %v478_v23  ;;  %v480_v28 = vld [vmem:[%s978_s0 + $0xc] ss:$16 sm:%s119_s23]   ;;  %s153_s12 = smov 192  ;;  %s169_s16 = smov 3  ;;  %v494_v46 = vld [vmem:[%s978_s0 + $0x8a] sm:$0x1]  }
   0xc   :  { %v122_v29 = vsel %vm10_vm1, %v480_v28, %v117_v27  ;;  %v481_v30 = vld [vmem:[%s978_s0 + $0xc] ss:$16 sm:%s124_s24]   ;;  %v484_v31 = vld [vmem:[%s978_s0 + $0xb] ss:$16 sm:%s140_s29]   ;;  %s172_s17 = smov 12  ;;  %s177_s13 = smov 48 }
   0xd   :  { %99 = vrot.lane.b32.xlu0 %v98_v25, %s567_s30  ;;  %v485_v32 = vld [vmem:[%s978_s0 + $0xb] ss:$16 sm:%s143_s6]   ;;  %v127_v33 = vsel %vm14_vm2, %v481_v30, %v122_v29  ;;  %s568_s22 = smov 96   ;;  %s198_s27 = smov 3  ;;  %v500_v54 = vld [vmem:[%s978_s0 + $0x89] sm:$0x1]  }
   0xe   :  { %v146_v34 = vsel %vm6_vm0, %v485_v32, %v484_v31  ;;  %v486_v35 = vld [vmem:[%s978_s0 + $0xb] ss:$16 sm:%s148_s7]   ;;  %v490_v39 = vld [vmem:[%s978_s0 + $0xa] ss:$16 sm:%s169_s16]   ;;  %s182_s3 = smov 192  ;;  %s201_s4 = smov 12 }
   0xf   :  { %v487_v36 = vld [vmem:[%s978_s0 + $0xb] ss:$16 sm:%s153_s12]   ;;  %134 = vrot.lane.b32.xlu1 %v482_v26, %s568_s22  ;;  %v151_v38 = vsel %vm10_vm1, %v486_v35, %v146_v34  ;;  %s206_s5 = smov 48  ;;  %s227_s10 = smov 3  ;;  %v506_v62 = vld [vmem:[%s978_s0 + $0x88] sm:$0x1]  }
  0x10   :  { %v491_v40 = vld [vmem:[%s978_s0 + $0xa] ss:$16 sm:%s172_s17]   ;;  %v156_v43 = vsel %vm14_vm2, %v487_v36, %v151_v38  ;;  %v496_v44 = vld [vmem:[%s978_s0 + $0x9] ss:$16 sm:%s198_s27]   ;;  %s230_s11 = smov 12  ;;  %s569_s12 = smov 88  }
  0x11   :  { %v492_v41 = vld [vmem:[%s978_s0 + $0xa] ss:$16 sm:%s177_s13]   ;;  %128 = vrot.lane.b32.xlu0 %v127_v33, %s568_s22  ;;  %v175_v42 = vsel %vm6_vm0, %v491_v40, %v490_v39  ;;  %s211_s20 = smov 192  ;;  %s235_s24 = smov 48  ;;  %v512_v6 = vld [vmem:[%s978_s0 + $0x87] sm:$0x1]  }
  0x12   :  { %v497_v45 = vld [vmem:[%s978_s0 + $0x9] ss:$16 sm:%s201_s4]   ;;  %v180_v47 = vsel %vm10_vm1, %v492_v41, %v175_v42  ;;  %v493_v48 = vld [vmem:[%s978_s0 + $0xa] ss:$16 sm:%s182_s3]   ;;  %s256_s25 = smov 3  ;;  %s259_s26 = smov 12 }
  0x13   :  { %163 = vrot.lane.b32.xlu1 %v488_v37, %s569_s12  ;;  %v204_v49 = vsel %vm6_vm0, %v497_v45, %v496_v44  ;;  %v498_v50 = vld [vmem:[%s978_s0 + $0x9] ss:$16 sm:%s206_s5]   ;;  %v185_v53 = vsel %vm14_vm2, %v493_v48, %v180_v47  ;;  %s570_s27 = smov 80   ;;  %s240_s5 = smov 192  ;;  %v458_v9 = vld [vmem:[%s978_s0 + $0x80] sm:$0x1]  }
  0x14   :  { %v502_v51 = vld [vmem:[%s978_s0 + $0x8] ss:$16 sm:%s227_s10]   ;;  %v209_v55 = vsel %vm10_vm1, %v498_v50, %v204_v49  ;;  %v499_v56 = vld [vmem:[%s978_s0 + $0x9] ss:$16 sm:%s211_s20]   ;;  %s264_s10 = smov 48  ;;  %s571_s14 = smov 72  }
  0x15   :  { %157 = vrot.lane.b32.xlu0 %v156_v43, %s569_s12  ;;  %v503_v52 = vld [vmem:[%s978_s0 + $0x8] ss:$16 sm:%s230_s11]   ;;  %s285_s11 = smov 3  ;;  %v214_v61 = vsel %vm14_vm2, %v499_v56, %v209_v55  ;;  %s288_s12 = smov 12  ;;  %459 = vst.msk [vmem:[%s979_s1 + $0x8] sm:$0x1] %vm16_vm3, %v458_v9  }
  0x16   :  { %v233_v57 = vsel %vm6_vm0, %v503_v52, %v502_v51  ;;  %v504_v58 = vld [vmem:[%s978_s0 + $0x8] ss:$16 sm:%s235_s24]   ;;  %v508_v59 = vld [vmem:[%s978_s0 + $0x7] ss:$16 sm:%s256_s25]   ;;  %s269_s21 = smov 192  ;;  %s293_s25 = smov 48 }
  0x17   :  { %192 = vrot.lane.b32.xlu1 %v494_v46, %s570_s27  ;;  %v509_v60 = vld [vmem:[%s978_s0 + $0x7] ss:$16 sm:%s259_s26]   ;;  %v238_v63 = vsel %vm10_vm1, %v504_v58, %v233_v57  ;;  %s314_s26 = smov 3  ;;  %s317_s29 = smov 12  ;;  %v518_v15 = vld [vmem:[%s978_s0 + $0x86] sm:$0x1]  }
  0x18   :  { %v505_v0 = vld [vmem:[%s978_s0 + $0x8] ss:$16 sm:%s240_s5]   ;;  %v262_v1 = vsel %vm6_vm0, %v509_v60, %v508_v59  ;;  %v510_v2 = vld [vmem:[%s978_s0 + $0x7] ss:$16 sm:%s264_s10]   ;;  %s572_s30 = smov 64   ;;  %s298_s8 = smov 192 }
  0x19   :  { %186 = vrot.lane.b32.xlu0 %v185_v53, %s570_s27  ;;  %v514_v3 = vld [vmem:[%s978_s0 + $0x6] ss:$16 sm:%s285_s11]   ;;  %v243_v5 = vsel %vm14_vm2, %v505_v0, %v238_v63  ;;  %v267_v7 = vsel %vm10_vm1, %v510_v2, %v262_v1  ;;  %s322_s16 = smov 48  ;;  %s343_s17 = smov 3  ;;  %v524_v23 = vld [vmem:[%s978_s0 + $0x85] sm:$0x1]  }
  0x1a   :  { %v515_v4 = vld [vmem:[%s978_s0 + $0x6] ss:$16 sm:%s288_s12]   ;;  %v511_v8 = vld [vmem:[%s978_s0 + $0x7] ss:$16 sm:%s269_s21]   ;;  %s346_s18 = smov 12  ;;  %s573_s19 = smov 56  }
  0x1b   :  { %221 = vrot.lane.b32.xlu1 %v500_v54, %s571_s14  ;;  %v291_v10 = vsel %vm6_vm0, %v515_v4, %v514_v3  ;;  %v516_v11 = vld [vmem:[%s978_s0 + $0x6] ss:$16 sm:%s293_s25]   ;;  %v272_v14 = vsel %vm14_vm2, %v511_v8, %v267_v7  ;;  %s327_s25 = smov 192  ;;  %s351_s28 = smov 48  ;;  %v530_v35 = vld [vmem:[%s978_s0 + $0x84] sm:$0x1]  }
  0x1c   :  { %v520_v12 = vld [vmem:[%s978_s0 + $0x5] ss:$16 sm:%s314_s26]   ;;  %v296_v16 = vsel %vm10_vm1, %v516_v11, %v291_v10  ;;  %v517_v17 = vld [vmem:[%s978_s0 + $0x6] ss:$16 sm:%s298_s8]   ;;  %s356_s2 = smov 192  ;;  %s372_s3 = smov 3 }
  0x1d   :  { %215 = vrot.lane.b32.xlu0 %v214_v61, %s571_s14  ;;  %v521_v13 = vld [vmem:[%s978_s0 + $0x5] ss:$16 sm:%s317_s29]   ;;  %v301_v22 = vsel %vm14_vm2, %v517_v17, %v296_v16  ;;  %s375_s4 = smov 12  ;;  %s380_s5 = smov 48  ;;  %v536_v46 = vld [vmem:[%s978_s0 + $0x83] sm:$0x1]  }
  0x1e   :  { %v320_v18 = vsel %vm6_vm0, %v521_v13, %v520_v12  ;;  %v522_v19 = vld [vmem:[%s978_s0 + $0x5] ss:$16 sm:%s322_s16]   ;;  %v526_v20 = vld [vmem:[%s978_s0 + $0x4] ss:$16 sm:%s343_s17]   ;;  %s574_s6 = smov 48   ;;  %s2_s11 = smov 3 }
  0x1f   :  { %250 = vrot.lane.b32.xlu1 %v506_v62, %s572_s30  ;;  %v527_v21 = vld [vmem:[%s978_s0 + $0x4] ss:$16 sm:%s346_s18]   ;;  %v325_v24 = vsel %vm10_vm1, %v522_v19, %v320_v18  ;;  %s4_s12 = smov 12  ;;  %s8_s18 = smov 48  ;;  %v542_v56 = vld [vmem:[%s978_s0 + $0x82] sm:$0x1]  }
  0x20   :  { %v523_v25 = vld [vmem:[%s978_s0 + $0x5] ss:$16 sm:%s327_s25]   ;;  %v349_v26 = vsel %vm6_vm0, %v527_v21, %v526_v20  ;;  %v528_v27 = vld [vmem:[%s978_s0 + $0x4] ss:$16 sm:%s351_s28]   ;;  %s401_s22 = smov 3  ;;  %s12_s23 = smov 192 }
  0x21   :  { %244 = vrot.lane.b32.xlu0 %v243_v5, %s572_s30  ;;  %v532_v28 = vld [vmem:[%s978_s0 + $0x3] ss:$16 sm:%s372_s3]   ;;  %v330_v31 = vsel %vm14_vm2, %v523_v25, %v325_v24  ;;  %s404_s26 = smov 12  ;;  %v354_v36 = vsel %vm10_vm1, %v528_v27, %v349_v26  ;;  %s385_s7 = smov 192  ;;  %v548_v62 = vld [vmem:[%s978_s0 + $0x81] sm:$0x1]  }
  0x22   :  { %v529_v29 = vld [vmem:[%s978_s0 + $0x4] ss:$16 sm:%s356_s2]   ;;  %v533_v30 = vld [vmem:[%s978_s0 + $0x3] ss:$16 sm:%s375_s4]   ;;  %s575_s2 = smov 40   ;;  %s409_s15 = smov 48 }
  0x23   :  { %279 = vrot.lane.b32.xlu1 %v512_v6, %s573_s19  ;;  %v534_v32 = vld [vmem:[%s978_s0 + $0x3] ss:$16 sm:%s380_s5]   ;;  %v378_v39 = vsel %vm6_vm0, %v533_v30, %v532_v28  ;;  %s430_s16 = smov 3  ;;  %v359_v45 = vsel %vm14_vm2, %v529_v29, %v354_v36  ;;  %s433_s17 = smov 12  ;;  %vm101_vm6 = vcmask 917312   ;;  %vm130_vm7 = vcmask 851712  }
  0x24   :  { %v3_v33 = vld [vmem:[%s978_s0] ss:$16 sm:%s2_s11]   ;;  %v538_v40 = vld [vmem:[%s978_s0 + $0x2] ss:$16 sm:%s401_s22]   ;;  %s576_s20 = smov 32   ;;  %v383_v47 = vsel %vm10_vm1, %v534_v32, %v378_v39  ;;  %s577_s3 = smov 24  }
  0x25   :  { %273 = vrot.lane.b32.xlu0 %v272_v14, %s573_s19  ;;  %v5_v34 = vld [vmem:[%s978_s0] ss:$16 sm:%s4_s12]   ;;  %s443_s10 = smov 192  ;;  %s578_s11 = smov 16   ;;  %vm159_vm8 = vcmask 786112   ;;  %vm188_vm9 = vcmask 720512  }
  0x26   :  { %v7_v37 = vsel %vm6_vm0, %v5_v34, %v3_v33  ;;  %v9_v38 = vld [vmem:[%s978_s0] ss:$16 sm:%s8_s18]   ;;  %v539_v43 = vld [vmem:[%s978_s0 + $0x2] ss:$16 sm:%s404_s26]   ;;  %s414_s26 = smov 192  ;;  %vm217_vm10 = vcmask 654912  }
  0x27   :  { %308 = vrot.lane.b32.xlu1 %v518_v15, %s574_s6  ;;  %v11_v41 = vsel %vm10_vm1, %v9_v38, %v7_v37  ;;  %v13_v42 = vld [vmem:[%s978_s0] ss:$16 sm:%s12_s23]   ;;  %v407_v49 = vsel %vm6_vm0, %v539_v43, %v538_v40  ;;  %vm246_vm11 = vcmask 589312   ;;  %vm275_vm12 = vcmask 523712  }
  0x28   :  { %v15_v44 = vsel %vm14_vm2, %v13_v42, %v11_v41  ;;  %v535_v48 = vld [vmem:[%s978_s0 + $0x3] ss:$16 sm:%s385_s7]   ;;  %v540_v50 = vld [vmem:[%s978_s0 + $0x2] ss:$16 sm:%s409_s15]   ;;  %vm304_vm13 = vcmask 458112   ;;  %vm333_vm14 = vcmask 392512  }
  0x29   :  { %302 = vrot.lane.b32.xlu0 %v301_v22, %s574_s6  ;;  %17 = vst.msk [vmem:[%s979_s1] sm:$0xff] %vm16_vm3, %v15_v44   ;;  %v544_v51 = vld [vmem:[%s978_s0 + $0x1] ss:$16 sm:%s430_s16]   ;;  %v388_v53 = vsel %vm14_vm2, %v535_v48, %v383_v47  ;;  %v412_v54 = vsel %vm10_vm1, %v540_v50, %v407_v49  ;;  %vm362_vm15 = vcmask 326912  }
  0x2a   :  { %v545_v52 = vld [vmem:[%s978_s0 + $0x1] ss:$16 sm:%s433_s17]   ;;  %v541_v55 = vld [vmem:[%s978_s0 + $0x2] ss:$16 sm:%s414_s26]  }
  0x2b   :  { %337 = vrot.lane.b32.xlu1 %v524_v23, %s575_s2  ;;  %v436_v57 = vsel %vm6_vm0, %v545_v52, %v544_v51  ;;  %v417_v59 = vsel %vm14_vm2, %v541_v55, %v412_v54  ;;  %v547_v61 = vld [vmem:[%s978_s0 + $0x1] ss:$16 sm:%s443_s10]   ;;  %vm391_vm0 = vcmask 261312  }
  0x2d   :  { %331 = vrot.lane.b32.xlu0 %v330_v31, %s575_s2  ;;  %s438_s2 = smov 48 }
  0x2e   :  { %v546_v58 = vld [vmem:[%s978_s0 + $0x1] ss:$16 sm:%s438_s2]   ;;  %s579_s0 = smov 8  }
  0x2f   :  { %366 = vrot.lane.b32.xlu1 %v530_v35, %s576_s20  ;;  %v441_v60 = vsel %vm10_vm1, %v546_v58, %v436_v57  ;;  %vm420_vm1 = vcmask 195712  }
  0x30   :  { %v446_v63 = vsel %vm14_vm2, %v547_v61, %v441_v60  ;;  %vm449_vm2 = vcmask 130112  }
  0x31   :  { %360 = vrot.lane.b32.xlu0 %v359_v45, %s576_s20 }
  0x33   :  { %395 = vrot.lane.b32.xlu1 %v536_v46, %s577_s3 }
  0x35   :  { %389 = vrot.lane.b32.xlu0 %v388_v53, %s577_s3 }
  0x37   :  { %424 = vrot.lane.b32.xlu1 %v542_v56, %s578_s11 }
  0x39   :  { %418 = vrot.lane.b32.xlu0 %v417_v59, %s578_s11 }
  0x3b   :  { %453 = vrot.lane.b32.xlu1 %v548_v62, %s579_s0 }
  0x3d   :  { %447 = vrot.lane.b32.xlu0 %v446_v63, %s579_s0 }
  0x74   :  { %v77_v0 = vpop.permute.xlu1 %76   ;;  %v48_v1 = vpop.permute.xlu0 %47  }
  0x75   :  { %465 = vst.msk [vmem:[%s979_s1 + $0x8] sm:$0x1] %vm43_vm4, %v48_v1  }
  0x76   :  { %471 = vst.msk [vmem:[%s979_s1 + $0x8] sm:$0x1] %vm72_vm5, %v77_v0  }
  0x79   :  { %v71_v2 = vpop.permute.xlu1 %70  }
  0x7b   :  { %v42_v3 = vpop.permute.xlu0 %41  }
  0x7c   :  { %44 = vst.msk [vmem:[%s979_s1] sm:$0xff] %vm43_vm4, %v42_v3  }
  0x7d   :  { %73 = vst.msk [vmem:[%s979_s1] sm:$0xff] %vm72_vm5, %v71_v2   ;;  %v106_v4 = vpop.permute.xlu1 %105  }
  0x7e   :  { %477 = vst.msk [vmem:[%s979_s1 + $0x8] sm:$0x1] %vm101_vm6, %v106_v4  }
  0x7f   :  { %v100_v5 = vpop.permute.xlu0 %99  }
  0x80   :  { %102 = vst.msk [vmem:[%s979_s1] sm:$0xff] %vm101_vm6, %v100_v5  }
  0x81   :  { %v135_v6 = vpop.permute.xlu1 %134  }
  0x82   :  { %483 = vst.msk [vmem:[%s979_s1 + $0x8] sm:$0x1] %vm130_vm7, %v135_v6  }
  0x83   :  { %v129_v7 = vpop.permute.xlu0 %128  }
  0x84   :  { %131 = vst.msk [vmem:[%s979_s1] sm:$0xff] %vm130_vm7, %v129_v7  }
  0x85   :  { %v164_v8 = vpop.permute.xlu1 %163  }
  0x86   :  { %489 = vst.msk [vmem:[%s979_s1 + $0x8] sm:$0x1] %vm159_vm8, %v164_v8  }
  0x87   :  { %v158_v9 = vpop.permute.xlu0 %157  }
  0x88   :  { %160 = vst.msk [vmem:[%s979_s1] sm:$0xff] %vm159_vm8, %v158_v9  }
  0x89   :  { %v193_v10 = vpop.permute.xlu1 %192  }
  0x8a   :  { %495 = vst.msk [vmem:[%s979_s1 + $0x8] sm:$0x1] %vm188_vm9, %v193_v10  }
  0x8b   :  { %v187_v11 = vpop.permute.xlu0 %186  }
  0x8c   :  { %189 = vst.msk [vmem:[%s979_s1] sm:$0xff] %vm188_vm9, %v187_v11  }
  0x8d   :  { %v222_v12 = vpop.permute.xlu1 %221  }
  0x8e   :  { %501 = vst.msk [vmem:[%s979_s1 + $0x8] sm:$0x1] %vm217_vm10, %v222_v12  }
  0x8f   :  { %v216_v13 = vpop.permute.xlu0 %215  }
  0x90   :  { %218 = vst.msk [vmem:[%s979_s1] sm:$0xff] %vm217_vm10, %v216_v13  }
  0x91   :  { %v251_v14 = vpop.permute.xlu1 %250  }
  0x92   :  { %507 = vst.msk [vmem:[%s979_s1 + $0x8] sm:$0x1] %vm246_vm11, %v251_v14  }
  0x93   :  { %v245_v15 = vpop.permute.xlu0 %244  }
  0x94   :  { %247 = vst.msk [vmem:[%s979_s1] sm:$0xff] %vm246_vm11, %v245_v15  }
  0x95   :  { %v280_v16 = vpop.permute.xlu1 %279  }
  0x96   :  { %513 = vst.msk [vmem:[%s979_s1 + $0x8] sm:$0x1] %vm275_vm12, %v280_v16  }
  0x97   :  { %v274_v17 = vpop.permute.xlu0 %273  }
  0x98   :  { %276 = vst.msk [vmem:[%s979_s1] sm:$0xff] %vm275_vm12, %v274_v17  }
  0x99   :  { %v309_v18 = vpop.permute.xlu1 %308  }
  0x9a   :  { %519 = vst.msk [vmem:[%s979_s1 + $0x8] sm:$0x1] %vm304_vm13, %v309_v18  }
  0x9b   :  { %v303_v19 = vpop.permute.xlu0 %302  }
  0x9c   :  { %305 = vst.msk [vmem:[%s979_s1] sm:$0xff] %vm304_vm13, %v303_v19  }
  0x9d   :  { %v338_v20 = vpop.permute.xlu1 %337  }
  0x9e   :  { %525 = vst.msk [vmem:[%s979_s1 + $0x8] sm:$0x1] %vm333_vm14, %v338_v20  }
  0x9f   :  { %v332_v21 = vpop.permute.xlu0 %331  }
  0xa0   :  { %334 = vst.msk [vmem:[%s979_s1] sm:$0xff] %vm333_vm14, %v332_v21  }
  0xa1   :  { %v367_v22 = vpop.permute.xlu1 %366  }
  0xa2   :  { %531 = vst.msk [vmem:[%s979_s1 + $0x8] sm:$0x1] %vm362_vm15, %v367_v22  }
  0xa3   :  { %v361_v23 = vpop.permute.xlu0 %360  }
  0xa4   :  { %363 = vst.msk [vmem:[%s979_s1] sm:$0xff] %vm362_vm15, %v361_v23  }
  0xa5   :  { %v396_v24 = vpop.permute.xlu1 %395  }
  0xa6   :  { %537 = vst.msk [vmem:[%s979_s1 + $0x8] sm:$0x1] %vm391_vm0, %v396_v24  }
  0xa7   :  { %v390_v25 = vpop.permute.xlu0 %389  }
  0xa8   :  { %392 = vst.msk [vmem:[%s979_s1] sm:$0xff] %vm391_vm0, %v390_v25  }
  0xa9   :  { %v425_v26 = vpop.permute.xlu1 %424  }
  0xaa   :  { %543 = vst.msk [vmem:[%s979_s1 + $0x8] sm:$0x1] %vm420_vm1, %v425_v26  }
  0xab   :  { %v419_v27 = vpop.permute.xlu0 %418  }
  0xac   :  { %421 = vst.msk [vmem:[%s979_s1] sm:$0xff] %vm420_vm1, %v419_v27  }
  0xad   :  { %v454_v28 = vpop.permute.xlu1 %453  }
  0xae   :  { %549 = vst.msk [vmem:[%s979_s1 + $0x8] sm:$0x1] %vm449_vm2, %v454_v28  }
  0xaf   :  { %v448_v29 = vpop.permute.xlu0 %447  }
  0xb0   :  { %450 = vst.msk [vmem:[%s979_s1] sm:$0xff] %vm449_vm2, %v448_v29  }

// kernel: tile.41
= control target key start
LH: loop header
LB: loop body
LE: loop exit
PB: predicated region body
PF: predicated region fallthrough
CT: control target
= control target key end

     0   :  { %s28_s0 = inlined_call_operand.vmem [shape: f32[8], index: 0, kind: input, shape index: {}]   ;;  %s29_s1 = inlined_call_operand.vmem [shape: f32[16,8], index: 1, kind: output, shape index: {}]  }
   0x1   :  { %v4_v0 = vld [vmem:[%s28_s0] ss:$0 sm:$0xff] }
   0x2   :  { %5 = vst [vmem:[%s29_s1] sm:$0xff] %v4_v0  ;;  %8 = vst [vmem:[%s29_s1 + $0x8] sm:$0xff] %v4_v0 }

// kernel: depthwise_conv_block.1
= control target key start
LH: loop header
LB: loop body
LE: loop exit
PB: predicated region body
PF: predicated region fallthrough
CT: control target
= control target key end

     0   :  { %v38_v0 = vlaneseq  ;;  %vm86_vm0 = vcmask 1046528   ;;  %vm189_vm1 = vcmask 1045504   ;;  %s661_s29 = smov 16   ;;  %s662_s30 = smov 32   ;;  %s1024_s0 = inlined_call_operand.vmem [shape: f32[2,18,384], index: 0, kind: input, shape index: {}]   ;;  %s1025_s1 = inlined_call_operand.vmem [shape: f32[9,128], index: 1, kind: input, shape index: {}]   ;;  %s1026_s3 = inlined_call_operand.vmem [shape: f32[8,128], index: 3, kind: input, shape index: {}]   ;;  %s1027_s2 = inlined_call_operand.vmem [shape: f32[128,128], index: 2, kind: input, shape index: {}]   ;;  %s1028_s4 = inlined_call_operand.vmem [shape: f32[32,128], index: 4, kind: output, shape index: {}]  }
   0x1   :  { %v702_v8 = vld [vmem:[%s1024_s0] sm:$0xff]  ;;  %v707_v9 = vld [vmem:[%s1024_s0 + $0x8] sm:$0xff]  ;;  %v712_v10 = vld [vmem:[%s1024_s0 + $0x18] sm:$0xff]  ;;  %s663_s5 = smov 64  }
   0x2   :  { %v689_v1 = vshrl.u32 %v38_v0, 7  ;;  %v717_v11 = vld [vmem:[%s1024_s0 + $0x10] sm:$0xff]  ;;  %v722_v12 = vld [vmem:[%s1024_s0 + $0x48] sm:$0xff]  ;;  %v727_v13 = vld [vmem:[%s1024_s0 + $0x60] sm:$0xff] }
   0x3   :  { %v35_v14 = vld [vmem:[%s1025_s1] sm:$0xff]  ;;  %v742_v18 = vld [vmem:[%s1024_s0 + $0x50] sm:$0xff]  ;;  %v747_v19 = vld [vmem:[%s1024_s0 + $0x68] sm:$0xff] }
   0x4   :  { %v692_v2 = vsub.s32 0, %v689_v1  ;;  %v48_v3 = vsub.s32 1, %v689_v1  ;;  %v60_v4 = vsub.s32 2, %v689_v1  ;;  %v72_v5 = vsub.s32 3, %v689_v1  ;;  %v737_v17 = vld [vmem:[%s1024_s0 + $0x20] sm:$0xff]  ;;  %v759_v24 = vld [vmem:[%s1024_s0 + $0x28] sm:$0xff] }
   0x5   :  { %v107_v6 = vsub.s32 4, %v689_v1  ;;  %v141_v7 = vsub.s32 5, %v689_v1  ;;  %v175_v15 = vsub.s32 6, %v689_v1  ;;  %v210_v16 = vsub.s32 7, %v689_v1  ;;  %v764_v25 = vld [vmem:[%s1024_s0 + $0x58] sm:$0xff]  ;;  %v769_v26 = vld [vmem:[%s1024_s0 + $0x70] sm:$0xff] }
   0x6   :  { %v41_v20 = vrot.slane %v35_v14, %v692_v2  ;;  %v49_v21 = vrot.slane %v35_v14, %v48_v3  ;;  %v61_v22 = vrot.slane %v35_v14, %v60_v4  ;;  %v73_v23 = vrot.slane %v35_v14, %v72_v5  ;;  %v788_v35 = vld [vmem:[%s1024_s0 + $0x30] sm:$0x3]  ;;  %v801_v44 = vld [vmem:[%s1024_s0 + $0x78] sm:$0x3]  ;;  %v817_v62 = vld [vmem:[%s1024_s0 + $0x80] sm:$0x3] }
   0x7   :  { %v108_v27 = vrot.slane %v35_v14, %v107_v6  ;;  %v775_v28 = vrot.slane %v35_v14, %v141_v7  ;;  %v777_v29 = vrot.slane %v35_v14, %v175_v15  ;;  %v779_v30 = vrot.slane %v35_v14, %v210_v16  ;;  %v810_v53 = vld [vmem:[%s1024_s0 + $0x38] sm:$0x3] }
   0x8   :  { %v42_v31 = vmul.f32 %v41_v20, %v702_v8  ;;  %v43_v32 = vmul.f32 %v41_v20, %v712_v10  ;;  %v44_v33 = vmul.f32 %v41_v20, %v722_v12  ;;  %v45_v34 = vmul.f32 %v41_v20, %v727_v13 }
   0x9   :  { %v50_v36 = vmul.f32 %v49_v21, %v707_v9  ;;  %v51_v37 = vmul.f32 %v49_v21, %v737_v17  ;;  %v52_v38 = vmul.f32 %v49_v21, %v742_v18  ;;  %v53_v39 = vmul.f32 %v49_v21, %v747_v19 }
   0xa   :  { %v62_v40 = vmul.f32 %v61_v22, %v717_v11  ;;  %v63_v41 = vmul.f32 %v61_v22, %v759_v24  ;;  %v64_v42 = vmul.f32 %v61_v22, %v764_v25  ;;  %v65_v43 = vmul.f32 %v61_v22, %v769_v26 }
   0xb   :  { %v54_v45 = vadd.f32 %v50_v36, %v42_v31  ;;  %v55_v46 = vadd.f32 %v51_v37, %v43_v32  ;;  %v56_v47 = vadd.f32 %v52_v38, %v44_v33  ;;  %v57_v48 = vadd.f32 %v53_v39, %v45_v34  ;;  %v829_v34 = vld [vmem:[%s1024_s0 + $0x40] sm:$0x3] }
   0xc   :  { %v74_v49 = vmul.f32 %v73_v23, %v702_v8  ;;  %v75_v50 = vmul.f32 %v73_v23, %v712_v10  ;;  %v76_v51 = vmul.f32 %v73_v23, %v788_v35  ;;  %v77_v52 = vmul.f32 %v73_v23, %v722_v12 }
   0xd   :  { %v66_v54 = vadd.f32 %v62_v40, %v54_v45  ;;  %v67_v55 = vadd.f32 %v63_v41, %v55_v46  ;;  %v68_v56 = vadd.f32 %v64_v42, %v56_v47  ;;  %v69_v57 = vadd.f32 %v65_v43, %v57_v48 }
   0xe   :  { %v78_v58 = vmul.f32 %v73_v23, %v727_v13  ;;  %v79_v59 = vmul.f32 %v73_v23, %v801_v44  ;;  %v87_v60 = vrot.slane %v74_v49, 1  ;;  %v88_v61 = vrot.slane %v75_v50, 1  ;;  %v837_v49 = vld [vmem:[%s1024_s0 + $0x88] sm:$0x3] }
   0xf   :  { %v90_v63 = vrot.slane %v76_v51, 1  ;;  %v92_v0 = vrot.slane %v77_v52, 1  ;;  %v109_v14 = vmul.f32 %v108_v27, %v707_v9  ;;  %v110_v15 = vmul.f32 %v108_v27, %v737_v17 }
  0x10   :  { %v89_v16 = vsel %vm86_vm0, %v87_v60, %v88_v61  ;;  %v93_v20 = vrot.slane %v78_v58, 1  ;;  %v95_v21 = vrot.slane %v79_v59, 1  ;;  %v111_v22 = vmul.f32 %v108_v27, %v810_v53 }
  0x11   :  { %v91_v23 = vsel %vm86_vm0, %v88_v61, %v90_v63  ;;  %v101_v31 = vadd.f32 %v89_v16, %v66_v54  ;;  %v112_v32 = vmul.f32 %v108_v27, %v742_v18  ;;  %v113_v33 = vmul.f32 %v108_v27, %v747_v19 }
  0x12   :  { %v94_v36 = vsel %vm86_vm0, %v92_v0, %v93_v20  ;;  %v96_v37 = vsel %vm86_vm0, %v93_v20, %v95_v21  ;;  %v102_v38 = vadd.f32 %v91_v23, %v67_v55  ;;  %v114_v39 = vmul.f32 %v108_v27, %v817_v62 }
  0x13   :  { %v103_v40 = vadd.f32 %v94_v36, %v68_v56  ;;  %v104_v41 = vadd.f32 %v96_v37, %v69_v57  ;;  %v121_v42 = vrot.slane %v109_v14, 1  ;;  %v122_v43 = vrot.slane %v110_v15, 1 }
  0x14   :  { %v124_v45 = vrot.slane %v111_v22, 1  ;;  %v126_v46 = vrot.slane %v112_v32, 1  ;;  %v127_v47 = vrot.slane %v113_v33, 1  ;;  %v129_v48 = vrot.slane %v114_v39, 1 }
  0x15   :  { %v123_v50 = vsel %vm86_vm0, %v121_v42, %v122_v43  ;;  %v143_v51 = vmul.f32 %v775_v28, %v717_v11  ;;  %v144_v27 = vmul.f32 %v775_v28, %v759_v24  ;;  %v145_v52 = vmul.f32 %v775_v28, %v829_v34 }
  0x16   :  { %v125_v54 = vsel %vm86_vm0, %v122_v43, %v124_v45  ;;  %v128_v55 = vsel %vm86_vm0, %v126_v46, %v127_v47  ;;  %v130_v56 = vsel %vm86_vm0, %v127_v47, %v129_v48  ;;  %v135_v57 = vadd.f32 %v123_v50, %v101_v31 }
  0x17   :  { %v136_v58 = vadd.f32 %v125_v54, %v102_v38  ;;  %v137_v59 = vadd.f32 %v128_v55, %v103_v40  ;;  %v138_v60 = vadd.f32 %v130_v56, %v104_v41  ;;  %v146_v61 = vmul.f32 %v775_v28, %v764_v25 }
  0x18   :  { %v147_v63 = vmul.f32 %v775_v28, %v769_v26  ;;  %v148_v0 = vmul.f32 %v775_v28, %v837_v49  ;;  %v155_v14 = vrot.slane %v143_v51, 1  ;;  %v156_v15 = vrot.slane %v144_v27, 1 }
  0x19   :  { %v158_v16 = vrot.slane %v145_v52, 1  ;;  %v160_v20 = vrot.slane %v146_v61, 1  ;;  %v177_v21 = vmul.f32 %v777_v29, %v702_v8  ;;  %v178_v22 = vmul.f32 %v777_v29, %v712_v10 }
  0x1a   :  { %v157_v23 = vsel %vm86_vm0, %v155_v14, %v156_v15  ;;  %v161_v31 = vrot.slane %v147_v63, 1  ;;  %v163_v32 = vrot.slane %v148_v0, 1  ;;  %v179_v33 = vmul.f32 %v777_v29, %v788_v35 }
  0x1b   :  { %v159_v36 = vsel %vm86_vm0, %v156_v15, %v158_v16  ;;  %v169_v28 = vadd.f32 %v157_v23, %v135_v57  ;;  %v180_v37 = vmul.f32 %v777_v29, %v722_v12  ;;  %v181_v38 = vmul.f32 %v777_v29, %v727_v13 }
  0x1c   :  { %v162_v8 = vsel %vm86_vm0, %v160_v20, %v161_v31  ;;  %v164_v10 = vsel %vm86_vm0, %v161_v31, %v163_v32  ;;  %v170_v39 = vadd.f32 %v159_v36, %v136_v58  ;;  %v182_v40 = vmul.f32 %v777_v29, %v801_v44  ;;  %v561_v29 = vld [vmem:[%s1025_s1 + $0x8] ss:$0 sm:$0xff] }
  0x1d   :  { %v171_v41 = vadd.f32 %v162_v8, %v137_v59  ;;  %v172_v42 = vadd.f32 %v164_v10, %v138_v60  ;;  %v190_v35 = vrot.slane %v177_v21, 2  ;;  %v191_v43 = vrot.slane %v178_v22, 2 }
  0x1e   :  { %v193_v45 = vrot.slane %v179_v33, 2  ;;  %v195_v46 = vrot.slane %v180_v37, 2  ;;  %v196_v47 = vrot.slane %v181_v38, 2  ;;  %v198_v48 = vrot.slane %v182_v40, 2 }
  0x1f   :  { %v192_v12 = vsel %vm189_vm1, %v190_v35, %v191_v43  ;;  %v212_v13 = vmul.f32 %v779_v30, %v707_v9  ;;  %v213_v50 = vmul.f32 %v779_v30, %v737_v17  ;;  %v214_v51 = vmul.f32 %v779_v30, %v810_v53 }
  0x20   :  { %v194_v44 = vsel %vm189_vm1, %v191_v43, %v193_v45  ;;  %v197_v27 = vsel %vm189_vm1, %v195_v46, %v196_v47  ;;  %v199_v52 = vsel %vm189_vm1, %v196_v47, %v198_v48  ;;  %v204_v54 = vadd.f32 %v192_v12, %v169_v28 }
  0x21   :  { %v205_v55 = vadd.f32 %v194_v44, %v170_v39  ;;  %v206_v56 = vadd.f32 %v197_v27, %v171_v41  ;;  %v207_v9 = vadd.f32 %v199_v52, %v172_v42  ;;  %v215_v17 = vmul.f32 %v779_v30, %v742_v18 }
  0x22   :  { %v216_v53 = vmul.f32 %v779_v30, %v747_v19  ;;  %v217_v57 = vmul.f32 %v779_v30, %v817_v62  ;;  %v224_v58 = vrot.slane %v212_v13, 2  ;;  %v225_v59 = vrot.slane %v213_v50, 2  ;;  %v900_v62 = vld [vmem:[%s1026_s3] sm:$0xff]  ;;  %s660_s3 = smov 8  }
  0x23   :  { %v227_v60 = vrot.slane %v214_v51, 2  ;;  %v229_v61 = vrot.slane %v215_v17, 2  ;;  %v246_v63 = vmul.f32 %v561_v29, %v717_v11  ;;  %v247_v0 = vmul.f32 %v561_v29, %v759_v24 }
  0x24   :  { %v226_v14 = vsel %vm189_vm1, %v224_v58, %v225_v59  ;;  %v230_v15 = vrot.slane %v216_v53, 2  ;;  %v232_v16 = vrot.slane %v217_v57, 2  ;;  %v248_v18 = vmul.f32 %v561_v29, %v829_v34 }
  0x25   :  { %v228_v20 = vsel %vm189_vm1, %v225_v59, %v227_v60  ;;  %v238_v19 = vadd.f32 %v226_v14, %v204_v54  ;;  %v249_v21 = vmul.f32 %v561_v29, %v764_v25  ;;  %v250_v30 = vmul.f32 %v561_v29, %v769_v26 }
  0x26   :  { %v231_v11 = vsel %vm189_vm1, %v229_v61, %v230_v15  ;;  %v233_v24 = vsel %vm189_vm1, %v230_v15, %v232_v16  ;;  %v239_v22 = vadd.f32 %v228_v20, %v205_v55  ;;  %v251_v23 = vmul.f32 %v561_v29, %v837_v49 }
  0x27   :  { %v240_v34 = vadd.f32 %v231_v11, %v206_v56  ;;  %v241_v31 = vadd.f32 %v233_v24, %v207_v9  ;;  %v258_v32 = vrot.slane %v246_v63, 2  ;;  %v259_v33 = vrot.slane %v247_v0, 2 }
  0x28   :  { %v261_v36 = vrot.slane %v248_v18, 2  ;;  %v263_v25 = vrot.slane %v249_v21, 2  ;;  %v264_v28 = vrot.slane %v250_v30, 2  ;;  %v266_v26 = vrot.slane %v251_v23, 2 }
  0x29   :  { %v260_v37 = vsel %vm189_vm1, %v258_v32, %v259_v33  ;;  %v279_v38 = vrot.slane %v900_v62, %v692_v2 }
  0x2a   :  { %v262_v8 = vsel %vm189_vm1, %v259_v33, %v261_v36  ;;  %v265_v10 = vsel %vm189_vm1, %v263_v25, %v264_v28  ;;  %v267_v39 = vsel %vm189_vm1, %v264_v28, %v266_v26  ;;  %v272_v49 = vadd.f32 %v260_v37, %v238_v19  ;;  %v381_v25 = vld [vmem:[%s1027_s2 + $0x78] sm:$0xff]  ;;  %v380_v28 = vld [vmem:[%s1027_s2 + $0x70] sm:$0xff]  ;;  %v379_v26 = vld [vmem:[%s1027_s2 + $0x68] sm:$0xff] }
  0x2b   :  { %v273_v40 = vadd.f32 %v262_v8, %v239_v22  ;;  %v274_v41 = vadd.f32 %v265_v10, %v240_v34  ;;  %v275_v42 = vadd.f32 %v267_v39, %v241_v31  ;;  %582 = vmatprep.subr.mxu0 %v381_v25  ;;  %620 = vmatprep.subr.mxu1 %v381_v25  ;;  %v378_v37 = vld [vmem:[%s1027_s2 + $0x60] sm:$0xff]  ;;  %v376_v10 = vld [vmem:[%s1027_s2 + $0x50] sm:$0xff] }
  0x2c   :  { %v280_v35 = vadd.f32 %v279_v38, %v272_v49  ;;  %583 = vmatpush3.msra.mxu0 %v381_v25  ;;  %636 = vmatpush3.msra.mxu1 %v381_v25  ;;  %v375_v49 = vld [vmem:[%s1027_s2 + $0x48] sm:$0xff] }
  0x2d   :  { %v281_v43 = vadd.f32 %v279_v38, %v273_v40  ;;  %v282_v45 = vadd.f32 %v279_v38, %v274_v41  ;;  %v283_v46 = vadd.f32 %v279_v38, %v275_v42  ;;  %584 = vmatprep.subr.mxu0 %v380_v28  ;;  %621 = vmatprep.subr.mxu1 %v380_v28  ;;  %v377_v38 = vld [vmem:[%s1027_s2 + $0x58] sm:$0xff]  ;;  %v374_v40 = vld [vmem:[%s1027_s2 + $0x40] sm:$0xff]  ;;  %v372_v42 = vld [vmem:[%s1027_s2 + $0x30] sm:$0xff] }
  0x2e   :  { %585 = vmatpush3.msra.mxu0 %v380_v28  ;;  %637 = vmatpush3.msra.mxu1 %v380_v28  ;;  %v373_v41 = vld [vmem:[%s1027_s2 + $0x38] sm:$0xff] }
  0x2f   :  { %v284_v47 = vadd.f32 %v281_v43, %v280_v35  ;;  %586 = vmatprep.subr.mxu0 %v379_v26  ;;  %622 = vmatprep.subr.mxu1 %v379_v26 }
  0x30   :  { %587 = vmatpush3.msra.mxu0 %v379_v26  ;;  %638 = vmatpush3.msra.mxu1 %v379_v26 }
  0x31   :  { %v285_v48 = vadd.f32 %v284_v47, %v282_v45  ;;  %588 = vmatprep.subr.mxu0 %v378_v37  ;;  %623 = vmatprep.subr.mxu1 %v378_v37  ;;  %v367_v47 = vld [vmem:[%s1027_s2 + $0x8] sm:$0xff] }
  0x32   :  { %589 = vmatpush3.msra.mxu0 %v378_v37  ;;  %639 = vmatpush3.msra.mxu1 %v378_v37 }
  0x33   :  { %v286_v12 = vadd.f32 %v285_v48, %v283_v46  ;;  %590 = vmatprep.subr.mxu0 %v377_v38  ;;  %624 = vmatprep.subr.mxu1 %v377_v38  ;;  %v366_v48 = vld [vmem:[%s1027_s2] sm:$0xff] }
  0x34   :  { %591 = vmatpush3.msra.mxu0 %v377_v38  ;;  %640 = vmatpush3.msra.mxu1 %v377_v38 }
  0x35   :  { %v287_v13 = vrot.slane %v286_v12, 4  ;;  %592 = vmatprep.subr.mxu0 %v376_v10  ;;  %625 = vmatprep.subr.mxu1 %v376_v10 }
  0x36   :  { %593 = vmatpush3.msra.mxu0 %v376_v10  ;;  %641 = vmatpush3.msra.mxu1 %v376_v10 }
  0x37   :  { %v288_v50 = vadd.f32 %v287_v13, %v286_v12  ;;  %594 = vmatprep.subr.mxu0 %v375_v49  ;;  %626 = vmatprep.subr.mxu1 %v375_v49 }
  0x38   :  { %595 = vmatpush3.msra.mxu0 %v375_v49  ;;  %642 = vmatpush3.msra.mxu1 %v375_v49 }
  0x39   :  { %v289_v51 = vrot.slane %v288_v50, 2  ;;  %596 = vmatprep.subr.mxu0 %v374_v40  ;;  %627 = vmatprep.subr.mxu1 %v374_v40 }
  0x3a   :  { %597 = vmatpush3.msra.mxu0 %v374_v40  ;;  %643 = vmatpush3.msra.mxu1 %v374_v40 }
  0x3b   :  { %v290_v29 = vadd.f32 %v289_v51, %v288_v50  ;;  %598 = vmatprep.subr.mxu0 %v373_v41  ;;  %628 = vmatprep.subr.mxu1 %v373_v41 }
  0x3c   :  { %599 = vmatpush3.msra.mxu0 %v373_v41  ;;  %644 = vmatpush3.msra.mxu1 %v373_v41 }
  0x3d   :  { %v291_v44 = vrot.slane %v290_v29, 1  ;;  %600 = vmatprep.subr.mxu0 %v372_v42  ;;  %629 = vmatprep.subr.mxu1 %v372_v42 }
  0x3e   :  { %601 = vmatpush3.msra.mxu0 %v372_v42  ;;  %645 = vmatpush3.msra.mxu1 %v372_v42 }
  0x3f   :  { %v292_v27 = vadd.f32 %v291_v44, %v290_v29 }
  0x41   :  { %293 = vrot.lane.b32.xlu0 %v292_v27, %s660_s3 }
  0xb3   :  { %v294_v52 = vpop.permute.xlu0 %293 }
  0xb4   :  { %v295_v54 = vadd.f32 %v294_v52, %v292_v27 }
  0xb6   :  { %296 = vrot.lane.b32.xlu0 %v295_v54, %s661_s29 }
 0x128   :  { %v297_v55 = vpop.permute.xlu0 %296 }
 0x129   :  { %v298_v56 = vadd.f32 %v297_v55, %v295_v54  ;;  %v357_v54 = vrot.slane %v900_v62, %v60_v4  ;;  %v385_v4 = vrot.slane %v900_v62, %v72_v5 }
 0x12b   :  { %299 = vrot.lane.b32.xlu1 %v298_v56, %s662_s30 }
 0x19d   :  { %v300_v9 = vpop.permute.xlu1 %299 }
 0x19e   :  { %v301_v17 = vadd.f32 %v300_v9, %v298_v56 }
 0x1a0   :  { %302 = vrot.lane.b32.xlu1 %v301_v17, %s663_s5 }
 0x212   :  { %v303_v53 = vpop.permute.xlu1 %302 }
 0x213   :  { %v304_v57 = vadd.f32 %v303_v53, %v301_v17 }
 0x215   :  { %v305_v58 = vmul.f32 0.001953125, %v304_v57 }
 0x217   :  { %v309_v59 = vrot.slane %v305_v58, %v692_v2 }
 0x219   :  { %v916_v60 = vsub.f32 %v280_v35, %v309_v59  ;;  %v918_v61 = vsub.f32 %v281_v43, %v309_v59  ;;  %v920_v63 = vsub.f32 %v282_v45, %v309_v59  ;;  %v922_v0 = vsub.f32 %v283_v46, %v309_v59  ;;  %v371_v35 = vld [vmem:[%s1027_s2 + $0x28] sm:$0xff]  ;;  %v370_v43 = vld [vmem:[%s1027_s2 + $0x20] sm:$0xff]  ;;  %v369_v45 = vld [vmem:[%s1027_s2 + $0x18] sm:$0xff] }
 0x21a   :  { %602 = vmatprep.subr.mxu0 %v371_v35  ;;  %630 = vmatprep.subr.mxu1 %v371_v35  ;;  %v368_v46 = vld [vmem:[%s1027_s2 + $0x10] sm:$0xff] }
 0x21b   :  { %v314_v14 = vmul.f32 %v916_v60, %v916_v60  ;;  %v315_v15 = vmul.f32 %v918_v61, %v918_v61  ;;  %v316_v16 = vmul.f32 %v920_v63, %v920_v63  ;;  %v317_v20 = vmul.f32 %v922_v0, %v922_v0  ;;  %603 = vmatpush3.msra.mxu0 %v371_v35 }
 0x21c   :  { %646 = vmatpush3.msra.mxu1 %v371_v35  ;;  %604 = vmatprep.subr.mxu0 %v370_v43 }
 0x21d   :  { %v318_v18 = vadd.f32 %v315_v15, %v314_v14  ;;  %631 = vmatprep.subr.mxu1 %v370_v43  ;;  %605 = vmatpush3.msra.mxu0 %v370_v43 }
 0x21e   :  { %647 = vmatpush3.msra.mxu1 %v370_v43  ;;  %606 = vmatprep.subr.mxu0 %v369_v45 }
 0x21f   :  { %v319_v19 = vadd.f32 %v318_v18, %v316_v16  ;;  %632 = vmatprep.subr.mxu1 %v369_v45  ;;  %607 = vmatpush3.msra.mxu0 %v369_v45 }
 0x220   :  { %648 = vmatpush3.msra.mxu1 %v369_v45  ;;  %608 = vmatprep.subr.mxu0 %v368_v46 }
 0x221   :  { %v320_v21 = vadd.f32 %v319_v19, %v317_v20  ;;  %633 = vmatprep.subr.mxu1 %v368_v46  ;;  %609 = vmatpush3.msra.mxu0 %v368_v46 }
 0x222   :  { %649 = vmatpush3.msra.mxu1 %v368_v46  ;;  %610 = vmatprep.subr.mxu0 %v367_v47 }
 0x223   :  { %v321_v30 = vrot.slane %v320_v21, 4  ;;  %634 = vmatprep.subr.mxu1 %v367_v47  ;;  %611 = vmatpush3.msra.mxu0 %v367_v47 }
 0x224   :  { %650 = vmatpush3.msra.mxu1 %v367_v47  ;;  %612 = vmatprep.subr.mxu0 %v366_v48 }
 0x225   :  { %v322_v11 = vadd.f32 %v321_v30, %v320_v21  ;;  %635 = vmatprep.subr.mxu1 %v366_v48  ;;  %613 = vmatpush3.msra.mxu0 %v366_v48 }
 0x226   :  { %651 = vmatpush3.msra.mxu1 %v366_v48 }
 0x227   :  { %v323_v24 = vrot.slane %v322_v11, 2 }
 0x229   :  { %v324_v22 = vadd.f32 %v323_v24, %v322_v11 }
 0x22b   :  { %v325_v23 = vrot.slane %v324_v22, 1 }
 0x22d   :  { %v326_v34 = vadd.f32 %v325_v23, %v324_v22 }
 0x22f   :  { %327 = vrot.lane.b32.xlu0 %v326_v34, %s660_s3 }
 0x2a1   :  { %v328_v31 = vpop.permute.xlu0 %327 }
 0x2a2   :  { %v329_v32 = vadd.f32 %v328_v31, %v326_v34 }
 0x2a4   :  { %330 = vrot.lane.b32.xlu1 %v329_v32, %s661_s29 }
 0x316   :  { %v331_v33 = vpop.permute.xlu1 %330 }
 0x317   :  { %v332_v36 = vadd.f32 %v331_v33, %v329_v32 }
 0x319   :  { %333 = vrot.lane.b32.xlu0 %v332_v36, %s662_s30 }
 0x38b   :  { %v334_v8 = vpop.permute.xlu0 %333 }
 0x38c   :  { %v335_v39 = vadd.f32 %v334_v8, %v332_v36 }
 0x38e   :  { %336 = vrot.lane.b32.xlu1 %v335_v39, %s663_s5 }
 0x400   :  { %v337_v12 = vpop.permute.xlu1 %336 }
 0x401   :  { %v338_v13 = vadd.f32 %v337_v12, %v335_v39 }
 0x403   :  { %v339_v50 = vmul.f32 0.001953125, %v338_v13 }
 0x405   :  { %v340_v51 = vadd.f32 1e-05, %v339_v50 }
 0x407   :  { %656 = vrsqrt.f32 %v340_v51 }
 0x414   :  { %v657_v29 = vpop.eup %656 }
 0x415   :  { %v343_v44 = vrot.slane %v657_v29, 7 }
 0x417   :  { %v345_v27 = vmul.f32 %v343_v44, %v900_v62 }
 0x419   :  { %v349_v52 = vrot.slane %v345_v27, %v48_v3 }
 0x41b   :  { %v350_v55 = vmul.f32 %v349_v52, %v916_v60  ;;  %v352_v56 = vmul.f32 %v349_v52, %v920_v63  ;;  %v351_v9 = vmul.f32 %v349_v52, %v918_v61  ;;  %v353_v17 = vmul.f32 %v349_v52, %v922_v0 }
 0x41d   :  { %v358_v53 = vadd.f32 %v357_v54, %v350_v55  ;;  %v360_v57 = vadd.f32 %v357_v54, %v352_v56  ;;  %v359_v58 = vadd.f32 %v357_v54, %v351_v9  ;;  %v361_v59 = vadd.f32 %v357_v54, %v353_v17 }
 0x41f   :  { %v362_v14 = vmax.f32 %v358_v53, 0.0  ;;  %v364_v15 = vmax.f32 %v360_v57, 0.0  ;;  %v363_v16 = vmax.f32 %v359_v58, 0.0  ;;  %v365_v3 = vmax.f32 %v361_v59, 0.0 }
 0x421   :  { %614 = vmatprep.mubr.f32.mxu0 %v362_v14  ;;  %617 = vmatprep.mubr.f32.mxu1 %v364_v15 }
 0x422   :  { %615 = vmatmul.mubr.f32.vlgmr.msra.gmra.mxu0 %v363_v16  ;;  %618 = vmatmul.mubr.f32.vlgmr.msra.gmra.mxu1 %v365_v3  ;;  %v544_v16 = vrot.slane %v900_v62, %v141_v7 }
 0x4e2   :  { %v616_v60 = vpop.f32.mrf.mxu0  ;;  %v619_v61 = vpop.f32.mrf.mxu1 }
 0x4e3   :  { %v458_v18 = vadd.f32 %v616_v60, %v385_v4  ;;  %v468_v30 = vadd.f32 %v619_v61, %v385_v4 }
 0x4e4   :  { %v452_v63 = vpop.f32.mrf.mxu0  ;;  %v462_v0 = vpop.f32.mrf.mxu1 }
 0x4e5   :  { %v453_v20 = vadd.f32 %v452_v63, %v385_v4  ;;  %v463_v21 = vadd.f32 %v462_v0, %v385_v4 }
 0x4e7   :  { %v471_v19 = vadd.f32 %v458_v18, %v453_v20 }
 0x4e9   :  { %v472_v11 = vadd.f32 %v471_v19, %v463_v21 }
 0x4eb   :  { %v473_v24 = vadd.f32 %v472_v11, %v468_v30 }
 0x4ed   :  { %v474_v22 = vrot.slane %v473_v24, 4 }
 0x4ef   :  { %v475_v23 = vadd.f32 %v474_v22, %v473_v24 }
 0x4f1   :  { %v476_v34 = vrot.slane %v475_v23, 2 }
 0x4f3   :  { %v477_v31 = vadd.f32 %v476_v34, %v475_v23 }
 0x4f5   :  { %v478_v32 = vrot.slane %v477_v31, 1 }
 0x4f7   :  { %v479_v33 = vadd.f32 %v478_v32, %v477_v31 }
 0x4f9   :  { %480 = vrot.lane.b32.xlu0 %v479_v33, %s660_s3 }
 0x56b   :  { %v481_v5 = vpop.permute.xlu0 %480 }
 0x56c   :  { %v482_v36 = vadd.f32 %v481_v5, %v479_v33 }
 0x56e   :  { %483 = vrot.lane.b32.xlu1 %v482_v36, %s661_s29 }
 0x5e0   :  { %v484_v25 = vpop.permute.xlu1 %483 }
 0x5e1   :  { %v485_v28 = vadd.f32 %v484_v25, %v482_v36 }
 0x5e3   :  { %486 = vrot.lane.b32.xlu0 %v485_v28, %s662_s30 }
 0x655   :  { %v487_v26 = vpop.permute.xlu0 %486 }
 0x656   :  { %v488_v37 = vadd.f32 %v487_v26, %v485_v28 }
 0x658   :  { %489 = vrot.lane.b32.xlu1 %v488_v37, %s663_s5 }
 0x6ca   :  { %v490_v38 = vpop.permute.xlu1 %489 }
 0x6cb   :  { %v491_v8 = vadd.f32 %v490_v38, %v488_v37 }
 0x6cd   :  { %v492_v10 = vmul.f32 0.001953125, %v491_v8 }
 0x6cf   :  { %v496_v39 = vrot.slane %v492_v10, %v692_v2 }
 0x6d1   :  { %v497_v49 = vsub.f32 %v453_v20, %v496_v39  ;;  %v498_v40 = vsub.f32 %v458_v18, %v496_v39  ;;  %v499_v41 = vsub.f32 %v463_v21, %v496_v39  ;;  %v500_v42 = vsub.f32 %v468_v30, %v496_v39 }
 0x6d3   :  { %v501_v35 = vmul.f32 %v497_v49, %v497_v49  ;;  %v502_v43 = vmul.f32 %v498_v40, %v498_v40  ;;  %v503_v45 = vmul.f32 %v499_v41, %v499_v41  ;;  %v504_v47 = vmul.f32 %v500_v42, %v500_v42 }
 0x6d5   :  { %v505_v46 = vadd.f32 %v502_v43, %v501_v35 }
 0x6d7   :  { %v506_v48 = vadd.f32 %v505_v46, %v503_v45 }
 0x6d9   :  { %v507_v12 = vadd.f32 %v506_v48, %v504_v47 }
 0x6db   :  { %v508_v13 = vrot.slane %v507_v12, 4 }
 0x6dd   :  { %v509_v50 = vadd.f32 %v508_v13, %v507_v12 }
 0x6df   :  { %v510_v51 = vrot.slane %v509_v50, 2 }
 0x6e1   :  { %v511_v29 = vadd.f32 %v510_v51, %v509_v50 }
 0x6e3   :  { %v512_v44 = vrot.slane %v511_v29, 1 }
 0x6e5   :  { %v513_v27 = vadd.f32 %v512_v44, %v511_v29 }
 0x6e7   :  { %514 = vrot.lane.b32.xlu0 %v513_v27, %s660_s3 }
 0x759   :  { %v515_v2 = vpop.permute.xlu0 %514 }
 0x75a   :  { %v516_v52 = vadd.f32 %v515_v2, %v513_v27 }
 0x75c   :  { %517 = vrot.lane.b32.xlu1 %v516_v52, %s661_s29 }
 0x7ce   :  { %v518_v54 = vpop.permute.xlu1 %517 }
 0x7cf   :  { %v519_v55 = vadd.f32 %v518_v54, %v516_v52 }
 0x7d1   :  { %520 = vrot.lane.b32.xlu0 %v519_v55, %s662_s30 }
 0x843   :  { %v521_v56 = vpop.permute.xlu0 %520 }
 0x844   :  { %v522_v9 = vadd.f32 %v521_v56, %v519_v55 }
 0x846   :  { %523 = vrot.lane.b32.xlu1 %v522_v9, %s663_s5 }
 0x8b8   :  { %v524_v17 = vpop.permute.xlu1 %523 }
 0x8b9   :  { %v525_v53 = vadd.f32 %v524_v17, %v522_v9 }
 0x8bb   :  { %v526_v57 = vmul.f32 0.001953125, %v525_v53 }
 0x8bd   :  { %v527_v58 = vadd.f32 1e-05, %v526_v57 }
 0x8bf   :  { %658 = vrsqrt.f32 %v527_v58 }
 0x8cc   :  { %v659_v59 = vpop.eup %658 }
 0x8cd   :  { %v530_v14 = vrot.slane %v659_v59, 4 }
 0x8cf   :  { %v532_v15 = vmul.f32 %v530_v14, %v900_v62 }
 0x8d1   :  { %v536_v3 = vrot.slane %v532_v15, %v107_v6 }
 0x8d3   :  { %v537_v4 = vmul.f32 %v536_v3, %v497_v49  ;;  %v538_v60 = vmul.f32 %v536_v3, %v498_v40  ;;  %v539_v61 = vmul.f32 %v536_v3, %v499_v41  ;;  %v540_v63 = vmul.f32 %v536_v3, %v500_v42 }
 0x8d5   :  { %v545_v0 = vadd.f32 %v544_v16, %v537_v4  ;;  %v546_v18 = vadd.f32 %v544_v16, %v538_v60  ;;  %v547_v20 = vadd.f32 %v544_v16, %v539_v61  ;;  %v548_v19 = vadd.f32 %v544_v16, %v540_v63 }
 0x8d7   :  { %v549_v21 = vmax.f32 %v545_v0, 0.0  ;;  %v550_v30 = vmax.f32 %v546_v18, 0.0  ;;  %v551_v11 = vmax.f32 %v547_v20, 0.0  ;;  %v552_v24 = vmax.f32 %v548_v19, 0.0 }
 0x8d9   :  { %553 = vst [vmem:[%s1028_s4] sm:$0xff] %v549_v21  ;;  %554 = vst [vmem:[%s1028_s4 + $0x8] sm:$0xff] %v550_v30 }
 0x8da   :  { %555 = vst [vmem:[%s1028_s4 + $0x10] sm:$0xff] %v551_v11  ;;  %556 = vst [vmem:[%s1028_s4 + $0x18] sm:$0xff] %v552_v24 }

</bundles_post_ra>
